<compile_context>
chip_gen: v5e
topology: v5e:2x2
jax: 0.10.0
libtpu: 0.0.40
codegen_flags: <defaults>
</compile_context>

<pallas_src>
import functools

import jax
import jax.numpy as jnp
from jax.experimental import pallas as pl
from jax.experimental.pallas import tpu as pltpu


# ---------------------------------------------------------------------------
# Kernel
# ---------------------------------------------------------------------------
def msa_kernel(x_ref, wqkv_ref, bqkv_ref, out_ref, *, n_heads, d_head,
               use_bf16):
    bt, n, d = x_ref.shape
    x2 = x_ref[...].reshape(bt * n, d)            # leading-dim merge: layout-free

    w = wqkv_ref[...]                             # [d, 3d], resident
    if use_bf16:
        lhs, rhs = x2.astype(jnp.bfloat16), w.astype(jnp.bfloat16)
    else:
        lhs, rhs = x2, w

    # Single fused Q/K/V projection (one MXU pass); f32 accumulation.
    qkv = jnp.dot(lhs, rhs, preferred_element_type=jnp.float32)
    qkv = qkv + bqkv_ref[...]                     # [bt*n, 3d]
    qkv = qkv.reshape(bt, n, 3 * d)               # leading-dim split: layout-free

    for h in range(n_heads):                      # static unroll, H is small
        q_sl = slice(h * d_head, (h + 1) * d_head)
        k_sl = slice(d + h * d_head, d + (h + 1) * d_head)
        v_sl = slice(2 * d + h * d_head, 2 * d + (h + 1) * d_head)
        qh = qkv[:, :, q_sl]                      # scale already folded in
        kh = qkv[:, :, k_sl]
        vh = qkv[:, :, v_sl]

        if use_bf16:
            qm, km = qh.astype(jnp.bfloat16), kh.astype(jnp.bfloat16)
        else:
            qm, km = qh, kh
        s = jnp.einsum("bnd,bmd->bnm", qm, km,
                       preferred_element_type=jnp.float32)

        # Softmax in f32 (VPU/EUP path), normalization via one reciprocal/row.
        s = s - jnp.max(s, axis=-1, keepdims=True)
        p = jnp.exp(s)
        inv = pl.reciprocal(jnp.sum(p, axis=-1, keepdims=True), approx=False)
        a = p * inv

        if use_bf16:
            am, vm = a.astype(jnp.bfloat16), vh.astype(jnp.bfloat16)
        else:
            am, vm = a, vh
        oh = jnp.einsum("bnm,bmd->bnd", am, vm,
                        preferred_element_type=jnp.float32)

        # Direct slice write (no concatenate / extra temp).
        out_ref[:, :, h * d_head:(h + 1) * d_head] = oh.astype(out_ref.dtype)


# ---------------------------------------------------------------------------
# Wrapper helpers
# ---------------------------------------------------------------------------
def _estimate_vmem_bytes(bt, N, d, H):
    io = 2 * 2 * bt * N * d * 4            # x + out tiles, double-buffered
    qkv = bt * N * 3 * d * 4               # fused projection temp
    attn = 3 * bt * N * N * 4              # scores / probs / head-out live set
    w = 2 * (3 * d * d + 3 * d) * 4        # packed weights + bias (2 buffers)
    return io + qkv + attn + w


def _pick_batch_tile(B, N, d, H, vmem_budget=24 * 1024 * 1024):
    divisors = [t for t in range(1, B + 1) if B % t == 0]
    fit = [t for t in divisors if _estimate_vmem_bytes(t, N, d, H) <= vmem_budget]
    if not fit:
        return 1
    # Keep >=2 grid steps where possible (v7x dual-TC + pipelining).
    multi = [t for t in fit if B // t >= 2]
    return max(multi) if multi else max(fit)


def _pack_qkv(wq, bq, wk, bk, wv, bv):
    """Fold the H per-head [dh, dh] linears into one block-diagonal [d, 3d]
    weight and [1, 3d] bias; the softmax 1/sqrt(dh) scale is folded into the
    Q block (constant wrapper-side transform, exact up to f32 rounding)."""
    H, dh, _ = wq.shape
    d = H * dh
    scale = 1.0 / float(dh) ** 0.5
    wq = wq * scale
    bq = bq * scale

    w_packed = jnp.zeros((d, 3 * d), jnp.float32)
    b_packed = jnp.zeros((1, 3 * d), jnp.float32)
    for j, (w, b) in enumerate(((wq, bq), (wk, bk), (wv, bv))):
        for h in range(H):
            rows = slice(h * dh, (h + 1) * dh)
            cols = slice(j * d + h * dh, j * d + (h + 1) * dh)
            w_packed = w_packed.at[rows, cols].set(w[h].T.astype(jnp.float32))
            b_packed = b_packed.at[0, cols].set(b[h].astype(jnp.float32))
    return w_packed, b_packed


# ---------------------------------------------------------------------------
# Public forward
# ---------------------------------------------------------------------------
def fxt_msa_forward(x, wq, bq, wk, bk, wv, bv, *, batch_tile=None,
                    use_bf16_matmul=False):
    """x: [B, N, d] f32.  wq/wk/wv: [H, d_head, d_head] in PyTorch [out, in]
    layout.  bq/bk/bv: [H, d_head]."""
    B, N, d = x.shape
    H, dh, _ = wq.shape
    assert d == H * dh, "d must be divisible into n_heads"
    assert N % 8 == 0, "pad N to a multiple of 8 (sublane) before calling"
    # TODO(synk): for d > 256 the block-diagonal packing is mostly zeros;
    # switch to a [H, dh, dh] batched projection instead.
    assert d <= 256, "block-diagonal QKV packing only used for small d"

    if batch_tile is None:
        batch_tile = _pick_batch_tile(B, N, d, H)
    assert B % batch_tile == 0, "batch must be divisible by batch_tile"

    w_packed, b_packed = _pack_qkv(wq, bq, wk, bk, wv, bv)

    kernel = functools.partial(msa_kernel, n_heads=H, d_head=dh,
                               use_bf16=use_bf16_matmul)

    in_specs = [
        pl.BlockSpec((batch_tile, N, d), lambda i: (i, 0, 0)),
        pl.BlockSpec(w_packed.shape, lambda i: (0, 0)),   # resident, replicated
        pl.BlockSpec(b_packed.shape, lambda i: (0, 0)),   # resident, replicated
    ]
    out_spec = pl.BlockSpec((batch_tile, N, d), lambda i: (i, 0, 0))

    # Advisory cost model: fused projection + 2 attention GEMMs per head,
    # exp count as transcendentals, x/out/weight HBM traffic.
    flops = int(2 * B * N * d * 3 * d + 4 * B * H * N * N * dh)
    transcendentals = int(B * H * N * N)
    bytes_accessed = int(4 * (2 * B * N * d + w_packed.size + b_packed.size))

    est = _estimate_vmem_bytes(batch_tile, N, d, H)
    vmem_limit = int(min(max(4 * est, 32 * 1024 * 1024), 64 * 1024 * 1024))

    return pl.pallas_call(
        kernel,
        out_shape=jax.ShapeDtypeStruct((B, N, d), x.dtype),
        grid_spec=pltpu.PrefetchScalarGridSpec(
            num_scalar_prefetch=0,
            grid=(B // batch_tile,),
            in_specs=in_specs,
            out_specs=out_spec,
        ),
        compiler_params=pltpu.CompilerParams(
            dimension_semantics=("parallel",),
            vmem_limit_bytes=vmem_limit,
        ),
        cost_estimate=pl.CostEstimate(flops=flops,
                                      transcendentals=transcendentals,
                                      bytes_accessed=bytes_accessed),
    )(x, w_packed, b_packed)


# ---------------------------------------------------------------------------
# Reference (plain-JAX mirror of the PyTorch per-sequence / per-head loops)
# ---------------------------------------------------------------------------
def reference_forward(x, wq, bq, wk, bk, wv, bv):
    B, N, d = x.shape
    H, dh, _ = wq.shape
    outs = []
    for b in range(B):
        heads = []
        for h in range(H):
            seq = x[b, :, h * dh:(h + 1) * dh]
            q = seq @ wq[h].T + bq[h]
            k = seq @ wk[h].T + bk[h]
            v = seq @ wv[h].T + bv[h]
            att = jax.nn.softmax(q @ k.T / (dh ** 0.5), axis=-1)
            heads.append(att @ v)
        outs.append(jnp.concatenate(heads, axis=-1))
    return jnp.stack(outs, axis=0)


if __name__ == "__main__":
    B, N, d, H = 2, 8, 32, 2        # small demo shapes consistent with FxtMSA
    dh = d // H

    key = jax.random.PRNGKey(0)
    key, kx = jax.random.split(key)
    x = jax.random.normal(kx, (B, N, d), jnp.float32)

    ks = jax.random.split(key, 6)
    scale_w = 1.0 / float(dh) ** 0.5
    wq = jax.random.normal(ks[0], (H, dh, dh), jnp.float32) * scale_w
    wk = jax.random.normal(ks[1], (H, dh, dh), jnp.float32) * scale_w
    wv = jax.random.normal(ks[2], (H, dh, dh), jnp.float32) * scale_w
    bq = 0.1 * jax.random.normal(ks[3], (H, dh), jnp.float32)
    bk = 0.1 * jax.random.normal(ks[4], (H, dh), jnp.float32)
    bv = 0.1 * jax.random.normal(ks[5], (H, dh), jnp.float32)

    ref = reference_forward(x, wq, bq, wk, bk, wv, bv)

    # f32 MXU-operand path: exact parity with the reference at 1e-4.
    out = jax.block_until_ready(fxt_msa_forward(x, wq, bq, wk, bk, wv, bv))
    assert out.shape == (B, N, d)
    assert jnp.allclose(out, ref, atol=1e-4, rtol=1e-4), "f32 path mismatch"

    # bf16 MXU-operand path (v5e/v6e/v7x throughput recommendation): f32
    # accumulation, f32 softmax.  Checked with a loose tolerance only.
    out_bf16 = jax.block_until_ready(
        fxt_msa_forward(x, wq, bq, wk, bk, wv, bv, use_bf16_matmul=True))
    assert out_bf16.shape == (B, N, d)
    assert jnp.allclose(out_bf16, ref, atol=1e-1, rtol=1e-1), "bf16 path mismatch"

    print("KERNEL_OK")
</pallas_src>

<mosaic_0001>
module attributes {stable_mosaic.version = 11 : i64} {
  func.func @msa_kernel(%arg0: i32, %arg1: memref<1x8x32xf32, #tpu.memory_space<vmem>>, %arg2: memref<32x96xf32, #tpu.memory_space<vmem>>, %arg3: memref<1x96xf32, #tpu.memory_space<vmem>>, %arg4: memref<1x8x32xf32, #tpu.memory_space<vmem>>) attributes {dimension_semantics = [#tpu.dimension_semantics<parallel>], iteration_bounds = array<i64: 2>, scalar_prefetch = 0 : i64, scratch_operands = 0 : i64, tpu.core_type = #tpu.core_type<tc>, window_params = [{transform_indices = @transform_0, window_bounds = array<i64: 1, 8, 32>}, {pipeline_mode = #tpu.pipeline_mode<synchronous>, transform_indices = @transform_1, window_bounds = array<i64: 32, 96>}, {pipeline_mode = #tpu.pipeline_mode<synchronous>, transform_indices = @transform_2, window_bounds = array<i64: 1, 96>}, {transform_indices = @transform_3, window_bounds = array<i64: 1, 8, 32>}]} {
    %c0 = arith.constant 0 : index
    %c0_0 = arith.constant 0 : index
    %c0_1 = arith.constant 0 : index
    %0 = vector.load %arg1[%c0, %c0_0, %c0_1] : memref<1x8x32xf32, #tpu.memory_space<vmem>>, vector<1x8x32xf32>
    %1 = vector.shape_cast %0 : vector<1x8x32xf32> to vector<8x32xf32>
    %c0_2 = arith.constant 0 : index
    %c0_3 = arith.constant 0 : index
    %2 = vector.load %arg2[%c0_2, %c0_3] : memref<32x96xf32, #tpu.memory_space<vmem>>, vector<32x96xf32>
    %cst = arith.constant dense<0.000000e+00> : vector<8x96xf32>
    %3 = tpu.matmul %1, %2, %cst {dimension_numbers = #tpu.dot_dimension_numbers<[1], [0], [0], [1], [0, 0, 1, 1], [], []>} : vector<8x32xf32>, vector<32x96xf32>, vector<8x96xf32> -> vector<8x96xf32>
    %c0_4 = arith.constant 0 : index
    %c0_5 = arith.constant 0 : index
    %4 = vector.load %arg3[%c0_4, %c0_5] : memref<1x96xf32, #tpu.memory_space<vmem>>, vector<1x96xf32>
    %5 = vector.broadcast %4 : vector<1x96xf32> to vector<8x96xf32>
    %6 = arith.addf %3, %5 : vector<8x96xf32>
    %7 = vector.shape_cast %6 : vector<8x96xf32> to vector<1x8x96xf32>
    %8 = vector.extract_strided_slice %7 {offsets = [0, 0, 0], sizes = [1, 8, 16], strides = [1, 1, 1]} : vector<1x8x96xf32> to vector<1x8x16xf32>
    %9 = vector.extract_strided_slice %7 {offsets = [0, 0, 32], sizes = [1, 8, 16], strides = [1, 1, 1]} : vector<1x8x96xf32> to vector<1x8x16xf32>
    %10 = vector.extract_strided_slice %7 {offsets = [0, 0, 64], sizes = [1, 8, 16], strides = [1, 1, 1]} : vector<1x8x96xf32> to vector<1x8x16xf32>
    "tpu.trace_start"() <{level = 10 : i32, message = "bnd,bmd->bnm"}> : () -> ()
    %cst_6 = arith.constant dense<0.000000e+00> : vector<1x8x8xf32>
    %11 = tpu.matmul %8, %9, %cst_6 {dimension_numbers = #tpu.dot_dimension_numbers<[2], [2], [1], [1], [0, 0, 0, 1, 1, 1], [0], [0]>} : vector<1x8x16xf32>, vector<1x8x16xf32>, vector<1x8x8xf32> -> vector<1x8x8xf32>
    "tpu.trace_stop"() : () -> ()
    %cst_7 = arith.constant dense<0xFF800000> : vector<1x8xf32>
    %12 = vector.multi_reduction <maximumf>, %11, %cst_7 [2] : vector<1x8x8xf32> to vector<1x8xf32>
    %13 = vector.shape_cast %12 : vector<1x8xf32> to vector<1x8x1xf32>
    %14 = vector.broadcast %13 : vector<1x8x1xf32> to vector<1x8x8xf32>
    %15 = arith.subf %11, %14 : vector<1x8x8xf32>
    %16 = math.exp %15 : vector<1x8x8xf32>
    %cst_8 = arith.constant dense<0.000000e+00> : vector<1x8xf32>
    %17 = vector.multi_reduction <add>, %16, %cst_8 [2] : vector<1x8x8xf32> to vector<1x8xf32>
    %18 = vector.shape_cast %17 : vector<1x8xf32> to vector<1x8x1xf32>
    %19 = tpu.reciprocal %18 : vector<1x8x1xf32> -> vector<1x8x1xf32>
    %20 = vector.broadcast %19 : vector<1x8x1xf32> to vector<1x8x8xf32>
    %21 = arith.mulf %16, %20 : vector<1x8x8xf32>
    "tpu.trace_start"() <{level = 10 : i32, message = "bnm,bmd->bnd"}> : () -> ()
    %cst_9 = arith.constant dense<0.000000e+00> : vector<1x8x16xf32>
    %22 = tpu.matmul %21, %10, %cst_9 {dimension_numbers = #tpu.dot_dimension_numbers<[2], [1], [1], [2], [0, 0, 0, 1, 1, 2], [0], [0]>} : vector<1x8x8xf32>, vector<1x8x16xf32>, vector<1x8x16xf32> -> vector<1x8x16xf32>
    "tpu.trace_stop"() : () -> ()
    %c0_10 = arith.constant 0 : index
    %c0_11 = arith.constant 0 : index
    %c0_12 = arith.constant 0 : index
    %23 = vector.load %arg4[%c0_10, %c0_11, %c0_12] : memref<1x8x32xf32, #tpu.memory_space<vmem>>, vector<1x8x16xf32>
    tpu.vector_store %arg4[%c0_10, %c0_11, %c0_12], %22 {strides = array<i32>} : memref<1x8x32xf32, #tpu.memory_space<vmem>>, vector<1x8x16xf32>,
    %24 = vector.extract_strided_slice %7 {offsets = [0, 0, 16], sizes = [1, 8, 16], strides = [1, 1, 1]} : vector<1x8x96xf32> to vector<1x8x16xf32>
    %25 = vector.extract_strided_slice %7 {offsets = [0, 0, 48], sizes = [1, 8, 16], strides = [1, 1, 1]} : vector<1x8x96xf32> to vector<1x8x16xf32>
    %26 = vector.extract_strided_slice %7 {offsets = [0, 0, 80], sizes = [1, 8, 16], strides = [1, 1, 1]} : vector<1x8x96xf32> to vector<1x8x16xf32>
    "tpu.trace_start"() <{level = 10 : i32, message = "bnd,bmd->bnm"}> : () -> ()
    %cst_13 = arith.constant dense<0.000000e+00> : vector<1x8x8xf32>
    %27 = tpu.matmul %24, %25, %cst_13 {dimension_numbers = #tpu.dot_dimension_numbers<[2], [2], [1], [1], [0, 0, 0, 1, 1, 1], [0], [0]>} : vector<1x8x16xf32>, vector<1x8x16xf32>, vector<1x8x8xf32> -> vector<1x8x8xf32>
    "tpu.trace_stop"() : () -> ()
    %cst_14 = arith.constant dense<0xFF800000> : vector<1x8xf32>
    %28 = vector.multi_reduction <maximumf>, %27, %cst_14 [2] : vector<1x8x8xf32> to vector<1x8xf32>
    %29 = vector.shape_cast %28 : vector<1x8xf32> to vector<1x8x1xf32>
    %30 = vector.broadcast %29 : vector<1x8x1xf32> to vector<1x8x8xf32>
    %31 = arith.subf %27, %30 : vector<1x8x8xf32>
    %32 = math.exp %31 : vector<1x8x8xf32>
    %cst_15 = arith.constant dense<0.000000e+00> : vector<1x8xf32>
    %33 = vector.multi_reduction <add>, %32, %cst_15 [2] : vector<1x8x8xf32> to vector<1x8xf32>
    %34 = vector.shape_cast %33 : vector<1x8xf32> to vector<1x8x1xf32>
    %35 = tpu.reciprocal %34 : vector<1x8x1xf32> -> vector<1x8x1xf32>
    %36 = vector.broadcast %35 : vector<1x8x1xf32> to vector<1x8x8xf32>
    %37 = arith.mulf %32, %36 : vector<1x8x8xf32>
    "tpu.trace_start"() <{level = 10 : i32, message = "bnm,bmd->bnd"}> : () -> ()
    %cst_16 = arith.constant dense<0.000000e+00> : vector<1x8x16xf32>
    %38 = tpu.matmul %37, %26, %cst_16 {dimension_numbers = #tpu.dot_dimension_numbers<[2], [1], [1], [2], [0, 0, 0, 1, 1, 2], [0], [0]>} : vector<1x8x8xf32>, vector<1x8x16xf32>, vector<1x8x16xf32> -> vector<1x8x16xf32>
    "tpu.trace_stop"() : () -> ()
    %c0_17 = arith.constant 0 : index
    %c0_18 = arith.constant 0 : index
    %c16 = arith.constant 16 : index
    %39 = vector.load %arg4[%c0_17, %c0_18, %c16] : memref<1x8x32xf32, #tpu.memory_space<vmem>>, vector<1x8x16xf32>
    tpu.vector_store %arg4[%c0_17, %c0_18, %c16], %38 {strides = array<i32>} : memref<1x8x32xf32, #tpu.memory_space<vmem>>, vector<1x8x16xf32>,
    return
  }
  func.func @transform_0(%arg0: i32) -> (i32, i32, i32) {
    %c0_i32 = arith.constant 0 : i32
    %c0_i32_0 = arith.constant 0 : i32
    %c0_i32_1 = arith.constant 0 : i32
    return %arg0, %c0_i32, %c0_i32_0 : i32, i32, i32
  }
  func.func @transform_1(%arg0: i32) -> (i32, i32) {
    %c0_i32 = arith.constant 0 : i32
    %c0_i32_0 = arith.constant 0 : i32
    %c0_i32_1 = arith.constant 0 : i32
    return %c0_i32, %c0_i32_0 : i32, i32
  }
  func.func @transform_2(%arg0: i32) -> (i32, i32) {
    %c0_i32 = arith.constant 0 : i32
    %c0_i32_0 = arith.constant 0 : i32
    %c0_i32_1 = arith.constant 0 : i32
    return %c0_i32, %c0_i32_0 : i32, i32
  }
  func.func @transform_3(%arg0: i32) -> (i32, i32, i32) {
    %c0_i32 = arith.constant 0 : i32
    %c0_i32_0 = arith.constant 0 : i32
    %c0_i32_1 = arith.constant 0 : i32
    return %arg0, %c0_i32, %c0_i32_0 : i32, i32, i32
  }
}

</mosaic_0001>

<bundles_post_ra>
// kernel: tpu_custom_call.1
= control target key start
LH: loop header
LB: loop body
LE: loop exit
PB: predicated region body
PF: predicated region fallthrough
CT: control target
= control target key end

     0   :  { %8 = vsyncpa [#allocation3], 0  ;;  %s908_s0 = inlined_call_operand.hbm [shape: f32[2,8,32], index: 0, kind: input, shape index: {}]   ;;  %s909_s1 = inlined_call_operand.hbm [shape: f32[32,96], index: 1, kind: input, shape index: {}]   ;;  %s910_s2 = inlined_call_operand.vmem [shape: f32[1,96], index: 2, kind: input, shape index: {}]   ;;  %s911_s3 = inlined_call_operand.hbm [shape: f32[2,8,32], index: 3, kind: output, shape index: {}]  }
   0x1   :  { %10 = vsyncpa [#allocation3 + $0x1], 0 }
   0x2   :  { %11 = vsyncpa [#allocation6], 0 }
   0x3   :  { %12 = vsyncpa [#allocation4], 0 }
   0x4   :  { %14 = vsyncpa [#allocation4 + $0x1], 0  ;;  %s754_s12 = smov 0   ;;  %s756_s13 = smov 0  }
   0x5   :  { %s758_s14 = smov 0   ;;  %s760_s15 = smov 0  }
   0x6 LB: > { %s130_s18 = sshll.u32 %s909_s1, 4  ;;  %s778_s19 = sadd.s32 4294967295, %s723_s15   ;;  %s723_s15 = sphi %s760_s15, %s921_s15   ;;  %s719_s14 = sphi %s758_s14, %s920_s14   ;;  %s715_s13 = sphi %s756_s13, %s919_s13   ;;  %s711_s12 = sphi %s754_s12, %s918_s12   ;;  %s131_s18 = int_to_ptr.hbm [resolvable:$true] %s130_s18 }
   0x7   : > { %p499_p0 = scmp.ge.s32.totalorder %s723_s15, 1  ;;  %p41_p1 = scmp.eq.s32.totalorder %s778_s19, 0 }
   0x8   : > { %p119_p2 = scmp.lt.s32.totalorder %s723_s15, 3  ;;  %s725_s21 = smov [#allocation5]  }
   0x9   : > { %s132_s22 = sshll.u32 %s725_s21, 4  ;;  %s726_s23 = smov 128   ;;  %s133_s22 = int_to_ptr.vmem [resolvable:$true] %s132_s22 }
   0xa   : > { %p783_p3 = pnand %p499_p0, %p119_p2  ;;  %s727_s24 = smov 8  }
   0xb   : > { %s498_s25 = sadd.s32 4294967294, %s723_s15   ;;  %s794_s26 = sadd.s32 1, %s723_s15  }
   0xc   : > { %p527_p4 = pneg %p783_p3  ;;  %s27_s27 = sadd.s32 1, %s719_s14 }
   0xd   : > { %s24_s28 = ssub.s32 %s723_s15, %s794_s26  ;;  %p34_p7 = scmp.ne.s32.totalorder %s719_s14, %s715_s13 }
   0xe   : > { %p528_p6 = pnand %p527_p4, %p41_p1  ;;  %p25_p8 = scmp.eq.s32.totalorder %s24_s28, 0 }
   0xf   : > { %p35_p9 = scmp.eq.s32.totalorder %s723_s15, 0  ;;  %p40_p10 = scmp.ne.s32.totalorder %s715_s13, %s711_s12 }
  0x10   : > { %530 = dma.hbm_to_vmem [thread:$0]  (!%p528_p6), %s131_s18, 512, %s133_s22, [#allocation6], %s726_s23, %s726_s23, %s727_s24  }
  0x11   : > { %p106_p11 = scmp.eq.s32.totalorder %s778_s19, 1  ;;  %p810_p12 = por %p41_p1, %p40_p10 }
  0x12   : > { %s806_s29 = scalar_select %p25_p8, %s719_s14, %s27_s27  }
  0x13   : > { %p814_p13 = por %p106_p11, %p34_p7  ;;  %p112_p0 = scmp.eq.s32.totalorder %s498_s25, 1 }
  0x14   : > { %p36_p2 = por %p35_p9, %p34_p7  ;;  %s149_s5 = sand.u32 1, %s719_s14  }
  0x15   : > { %p819_p4 = por %p112_p0, %p40_p10  ;;  %p540_p6 = scmp.lt.s32.totalorder %s723_s15, 2 }
  0x16   : > { %s502_s7 = sshll.u32 %s149_s5, 3  ;;  %s503_s8 = sshll.u32 %s723_s15, 3 }
  0x17   : > { %s157_s11 = scalar_lea.hbm %s908_s0, %s503_s8  ;;  %s153_s17 = scalar_lea.vmem [#allocation2], %s502_s7 }
  0x18   : > { %s159_s16 = sshll.u32 %s157_s11, 4  ;;  %s161_s18 = sshll.u32 %s153_s17, 4  ;;  %s160_s16 = int_to_ptr.hbm [resolvable:$true] %s159_s16  ;;  %s162_s18 = int_to_ptr.vmem [resolvable:$true] %s161_s18 }
  0x19   : > { %p828_p8 = pnand %p540_p6, %p36_p2  ;;  %s150_s22 = scalar_lea.sflag [#allocation3], %s149_s5 }
  0x1a   : > { %s623_s23 = sshra.s32 %s160_s16, 4  ;;  %s630_s28 = scalar_lea.hbm %s908_s0, 16  ;;  %s624_s23 = int_to_ptr.hbm [resolvable:$true] %s623_s23 }
  0x1b   : > { %s625_s24 = scalar_lea.hbm %s624_s23, 8  ;;  %p627_p9 = pneg %p828_p8 }
  0x1c   : > { %p626_p7 = scmp.ne.s32.totalorder %s624_s23, %s625_s24  ;;  %p631_p0 = scmp.lt.s32.totalorder %s624_s23, %s908_s0 }
  0x1d   : > { %p632_p2 = scmp.lt.s32.totalorder %s630_s28, %s625_s24 }
  0x1e   : > { %p628_p10 = pnand %p627_p9, %p626_p7 }
  0x1f   : > { %p633_p6 = por %p632_p2, %p631_p0 }
  0x20   : > { %p629_p11 = pneg %p628_p10 }
  0x22   : > { %p634_p5 = pnand %p633_p6, %p629_p11 }
  0x24   : > { %637 = shalt.err (!%p634_p5)
}
  0x25   : > { %534 = dma.hbm_to_vmem [thread:$0]  (!%p828_p8), %s160_s16, 128, %s162_s18, %s150_s22  }
  0x26   : > { %170 = sbr.rel (%p783_p3) target bundleno = 930 (0x3a2), region = 32  ;;  %s845_s5 = sand.u32 (!%p783_p3), 1, %s715_s13  }
  0x27   : > { %s505_s9 = sshll.u32 (!%p783_p3), %s845_s5, 3  ;;  %s173_s10 = scalar_lea.sflag (!%p783_p3), [#allocation3], %s845_s5 }
  0x28   : > { %s176_s11 = scalar_lea.vmem (!%p783_p3), [#allocation2], %s505_s9 }
  0x2b   : > { %698 = dma.done.wait (%p810_p12), %s173_s10, 128  }
  0x2c   : > { %700 = vsyncadd (%p810_p12), %s173_s10, 4294967168 }
  0x2d   : > { %702 = dma.done.wait (%p41_p1), [#allocation6], 512  }
  0x2e   : > { %704 = vsyncadd (%p41_p1), [#allocation6], 4294966784  ;;  %v209_v0 = vld [vmem:[#allocation5 + $0x18] sm:$0xff]  ;;  %v208_v1 = vld [vmem:[#allocation5 + $0x10] sm:$0xff]  ;;  %vm214_vm0 = vcmask 261120   ;;  %s728_s16 = smov 112  }
  0x2f   : > { %230 = vmatpush.msra.mxu0 %v209_v0  ;;  %v207_v2 = vld [vmem:[#allocation5 + $0x8] sm:$0xff]  ;;  %v206_v3 = vld [vmem:[#allocation5] sm:$0xff]  ;;  %v205_v4 = vld [vmem:[%s176_s11] sm:$0xff]  ;;  %s729_s17 = smov 96   ;;  %s730_s18 = smov 80   ;;  %vm241_vm1 = vcmask 130048  }
  0x30   : > { %v584_v5 = vld [vmem:[%s910_s2] ss:$0 sm:$0xff]  ;;  %vm266_vm2 = vcmask 64512   ;;  %s731_s21 = smov 64   ;;  %s732_s22 = smov 48   ;;  %vm400_vm11 = vcmask 261248  }
  0x31   : > { %231 = vmatpush.msra.mxu0 %v208_v1  ;;  %s204_s23 = scalar_lea.vmem [#allocation7], %s505_s9  ;;  %s733_s24 = smov 16  }
  0x32   : > { %s516_s25 = sshll.u32 %s778_s19, 3  ;;  %s415_s8 = sshll.u32 %s204_s23, 4  ;;  %s416_s8 = int_to_ptr.vmem [resolvable:$true] %s415_s8 }
  0x33   : > { %232 = vmatpush.msra.mxu0 %v207_v2  ;;  %s413_s7 = scalar_lea.hbm %s911_s3, %s516_s25  ;;  %s403_s11 = scalar_lea.sflag [#allocation4], %s845_s5 }
  0x34   : > { %s417_s10 = sshll.u32 %s413_s7, 4  ;;  %s418_s10 = int_to_ptr.hbm [resolvable:$true] %s417_s10 }
  0x35   : > { %233 = vmatpush.msra.mxu0 %v206_v3  ;;  %s667_s9 = sshra.s32 %s418_s10, 4  ;;  %s668_s9 = int_to_ptr.hbm [resolvable:$true] %s667_s9 }
  0x36   : > { %508 = vmatmul.msk.f32.vlgmr.msra.gmra.mxu0 %vm214_vm0, %v205_v4  ;;  %s669_s20 = scalar_lea.hbm %s668_s9, 8  ;;  %p674_p12 = scmp.lt.s32.totalorder %s668_s9, %s911_s3 }
  0x37   : > { %p670_p1 = scmp.ne.s32.totalorder %s668_s9, %s669_s20 }
  0x39   : > { %p671_p3 = pnand %p670_p1, %p814_p13 }
  0x3b   : > { %p672_p5 = pneg %p671_p3 }
  0xb3   : > { %v235_v6 = vpop.f32.mrf.mxu0 }
  0xb4   : > { %v236_v7 = vadd.f32 %v584_v5, %v235_v6 }
  0xb6   : > { %318 = vrot.lane.b32.xlu1 %v236_v7, %s728_s16  ;;  %239 = vrot.lane.b32.xlu0 %v236_v7, %s729_s17  ;;  %s673_s16 = scalar_lea.hbm %s911_s3, 16 }
  0xb7   : > { %p675_p8 = scmp.lt.s32.totalorder %s673_s16, %s669_s20 }
  0xb9   : > { %p676_p7 = por %p675_p8, %p674_p12 }
  0xbb   : > { %p677_p9 = pnand %p676_p7, %p672_p5 }
  0xbe   : > { %320 = vrot.lane.b32.xlu0 %v236_v7, %s730_s18 }
 0x128   : > { %v240_v8 = vpop.permute.xlu0 %239  ;;  %v319_v10 = vpop.permute.xlu1 %318 }
 0x129   : > { %509 = vmatpush.xpose.msk.msra.mxu1 %vm241_vm1, %v240_v8 }
 0x12c   : > { %510 = vmatmul.msk.f32.vlgmr.msra.gmra.mxu1 %vm241_vm1, %v236_v7 }
 0x130   : > { %v321_v9 = vpop.permute.xlu0 %320 }
 0x131   : > { %512 = vmatpush.xpose.msk.msra.mxu3 %vm241_vm1, %v321_v9 }
 0x134   : > { %513 = vmatmul.msk.f32.vlgmr.msra.gmra.mxu3 %vm241_vm1, %v319_v10 }
 0x1a9   : > { %v263_v11 = vpop.f32.mrf.mxu1 }
 0x1aa   : > { %v267_v12 = vsel %vm266_vm2, %v263_v11, -inf }
 0x1ab   : > { %268 = vmax.xlane.f32.xlu1 %v267_v12 }
 0x1b7   : > { %v343_v13 = vpop.f32.mrf.mxu3 }
 0x1b8   : > { %v346_v14 = vsel %vm266_vm2, %v343_v13, -inf }
 0x1b9   : > { %347 = vmax.xlane.f32.xlu2 %v346_v14 }
 0x21e   : > { %v269_v15 = vpop.xlane.xlu1 %268 }
 0x21f   : > { %v270_v16 = vsub.f32 %v263_v11, %v269_v15 }
 0x221   : > { %v271_v17 = vmul.f32 1.442695, %v270_v16 }
 0x223   : > { %585 = vpow2.f32 %v271_v17 }
 0x229   : > { %v586_v18 = vpop.eup %585 }
 0x22a   : > { %v273_v19 = vsel %vm266_vm2, %v586_v18, 0.0 }
 0x22b   : > { %274 = vadd.xlane.f32.xlu2 %v273_v19 }
 0x22c   : > { %v348_v20 = vpop.xlane.xlu2 %347 }
 0x22d   : > { %v349_v21 = vsub.f32 %v343_v13, %v348_v20 }
 0x22f   : > { %v350_v22 = vmul.f32 1.442695, %v349_v21 }
 0x231   : > { %587 = vpow2.f32 %v350_v22 }
 0x237   : > { %v588_v23 = vpop.eup %587 }
 0x238   : > { %v352_v24 = vsel %vm266_vm2, %v588_v23, 0.0 }
 0x239   : > { %353 = vadd.xlane.f32.xlu0 %v352_v24 }
 0x243   : > { %291 = vrot.lane.b32.xlu2 %v236_v7, %s731_s21 }
 0x24b   : > { %370 = vrot.lane.b32.xlu2 %v236_v7, %s732_s22 }
 0x29e   : > { %v275_v25 = vpop.xlane.xlu2 %274 }
 0x29f   : > { %589 = vrcp.f32 %v275_v25  ;;  %v287_v30 = vand.u32 2147483648, %v275_v25  ;;  %v285_v32 = vand.u32 2147483647, %v275_v25  ;;  %vm281_vm4 = vweird.f32 %v275_v25 }
 0x2a1   : > { %v288_v35 = vor.u32 1.1754944e-38, %v287_v30  ;;  %vm286_vm6 = vcmp.eq.f32.partialorder %v285_v32, 8.507059e+37 }
 0x2a5   : > { %v590_v26 = vpop.eup %589 }
 0x2a6   : > { %v277_v27 = vmul.f32 %v590_v26, %v275_v25  ;;  %v292_v28 = vpop.permute.xlu2 %291  ;;  %vm282_vm3 = vweird.f32 %v590_v26 }
 0x2a7   : > { %312 = vmatpush.msra.mxu2 %v292_v28  ;;  %vm283_vm5 = vmor %vm281_vm4, %vm282_vm3 }
 0x2a8   : > { %v278_v29 = vsub.f32 1.0, %v277_v27 }
 0x2aa   : > { %v279_v31 = vmul.f32 %v590_v26, %v278_v29 }
 0x2ac   : > { %v354_v33 = vpop.xlane.xlu0 %353  ;;  %v280_v34 = vadd.f32 %v590_v26, %v279_v31 }
 0x2ad   : > { %591 = vrcp.f32 %v354_v33  ;;  %v366_v43 = vand.u32 2147483648, %v354_v33  ;;  %v364_v45 = vand.u32 2147483647, %v354_v33  ;;  %vm360_vm8 = vweird.f32 %v354_v33 }
 0x2ae   : > { %v371_v36 = vpop.permute.xlu2 %370  ;;  %v284_v37 = vsel %vm283_vm5, %v590_v26, %v280_v34 }
 0x2af   : > { %391 = vmatpush.msrb.mxu2 %v371_v36  ;;  %v289_v38 = vsel %vm286_vm6, %v288_v35, %v284_v37  ;;  %v367_v47 = vor.u32 1.1754944e-38, %v366_v43  ;;  %vm365_vm10 = vcmp.eq.f32.partialorder %v364_v45, 8.507059e+37 }
 0x2b0   : > { %v290_v39 = vmul.f32 %v586_v18, %v289_v38 }
 0x2b2   : > { %511 = vmatmul.msk.f32.vlgmr.msra.gmra.mxu2 %vm266_vm2, %v290_v39 }
 0x2b3   : > { %v592_v40 = vpop.eup %591 }
 0x2b4   : > { %v356_v41 = vmul.f32 %v592_v40, %v354_v33  ;;  %vm361_vm7 = vweird.f32 %v592_v40 }
 0x2b5   : > { %vm362_vm9 = vmor %vm360_vm8, %vm361_vm7 }
 0x2b6   : > { %v357_v42 = vsub.f32 1.0, %v356_v41 }
 0x2b8   : > { %v358_v44 = vmul.f32 %v592_v40, %v357_v42 }
 0x2ba   : > { %v359_v46 = vadd.f32 %v592_v40, %v358_v44 }
 0x2bc   : > { %v363_v48 = vsel %vm362_vm9, %v592_v40, %v359_v46 }
 0x2bd   : > { %v368_v49 = vsel %vm365_vm10, %v367_v47, %v363_v48 }
 0x2be   : > { %v369_v50 = vmul.f32 %v588_v23, %v368_v49 }
 0x2c0   : > { %514 = vmatmul.msk.f32.vlgmr.msrb.gmra.mxu2 %vm266_vm2, %v369_v50 }
 0x335   : > { %v314_v51 = vpop.f32.mrf.mxu2 }
 0x336   : > { %317 = vst.msk [vmem:[%s204_s23] sm:$0xff] %vm241_vm1, %v314_v51 }
 0x343   : > { %v393_v52 = vpop.f32.mrf.mxu2 }
 0x344   : > { %397 = vrot.lane.b32.xlu2 %v393_v52, %s733_s24 }
 0x39e   : > { %v398_v53 = vpop.permute.xlu2 %397 }
 0x39f   : > { %401 = vst.msk [vmem:[%s204_s23] sm:$0xff] %vm400_vm11, %v398_v53 }
 0x3a0   : > { %680 = shalt.err (!%p677_p9)
}
 0x3a1   : > { %525 = dma.vmem_to_hbm [thread:$0]  (%p814_p13), %s416_s8, 128, %s418_s10, %s403_s11  }
 0x3a2 PF: > { %s429_s5 = sand.u32 1, %s711_s12   ;;  %p917_p10 = scmp.ge.s32.totalorder %s723_s15, 2 }
 0x3a3   : > { %s430_s21 = scalar_lea.sflag [#allocation4], %s429_s5 }
 0x3a4   : > { %p536_p11 = pnand %p917_p10, %p819_p4 }
 0x3a6   : > { %p537_p0 = pneg %p536_p11 }
 0x3a8   : > { %706 = dma.done.wait (%p537_p0), %s430_s21, 128  }
 0x3a9   : > { %708 = vsyncadd (%p537_p0), %s430_s21, 4294967168  ;;  %p17_p2 = scmp.ge.s32.totalorder %s794_s26, 4   ;;  %s918_s12 = smov %s715_s13 }
 0x3aa   : > { %s919_s13 = smov %s719_s14  ;;  %s920_s14 = smov %s806_s29 }
 0x3ab   : > { %s921_s15 = smov %s794_s26  ;;  %19 = sbr.rel (!%p17_p2) target bundleno = 6 (0x6), region = 81 }
 0x3b0   :  { %436 = vsyncpa [#allocation3], 1 }
 0x3b1   :  { %438 = vsyncpa [#allocation3 + $0x1], 1 }
 0x3b2   :  { %439 = vsyncpa [#allocation6], 1 }
 0x3b3   :  { %440 = vsyncpa [#allocation4], 1 }
 0x3b4   :  { %442 = vsyncpa [#allocation4 + $0x1], 1 }

</bundles_post_ra>
